<compile_context>
chip_gen: v5e
topology: v5e:2x2
jax: 0.10.0
libtpu: 0.0.40
codegen_flags: <defaults>
</compile_context>

<pallas_src>
import jax
import jax.numpy as jnp
from jax import lax
from jax.experimental import pallas as pl
from jax.experimental.pallas import tpu as pltpu


def frozen_hopfield_kernel(beta_ref, obs_ref, proj_ref, emb_ref, out_ref):
    # beta_ref: (1,)           SMEM scalar (inverse temperature)
    # obs_ref:  (TB, C, HWp)   batch tile of observations (pipelined over grid)
    # proj_ref: (Hp, HWp)      random projection, VMEM-resident
    # emb_ref:  (V,  Hp)       word embeddings, VMEM-resident
    # out_ref:  (TB, Hp)       retrieved state (lane-dense, Hp % 128 == 0)
    obs = obs_ref[...].astype(jnp.float32)                      # (TB, C, HWp)
    # Channel *sum* instead of mean: the 1/C cancels in the cosine similarity
    # (it is absorbed by the 1/||h|| scale below).
    x = jnp.sum(obs, axis=1)                                    # (TB, HWp)

    proj = proj_ref[...].astype(jnp.float32)                    # (Hp, HWp)
    # h = x @ P.T without materializing a transpose: contract the HW dims.
    h = lax.dot_general(x, proj, (((1,), (1,)), ((), ())),
                        preferred_element_type=jnp.float32)     # (TB, Hp)

    emb = emb_ref[...].astype(jnp.float32)                      # (V, Hp)

    beta = beta_ref[0]
    # Inverse norms on the EUP (rsqrt); tiny floor avoids inf/NaN on padded or
    # all-zero rows (matches the reference's +1e-8 behaviour in that case).
    inv_h = lax.rsqrt(jnp.maximum(jnp.sum(h * h, axis=-1, keepdims=True), 1e-16))
    inv_e = lax.rsqrt(jnp.maximum(jnp.sum(emb * emb, axis=-1, keepdims=True), 1e-16))
    h_n = h * (beta * inv_h)                                    # beta/||h|| folded into rows
    emb_n = emb * inv_e                                         # rows / ||e|| (no emb.T, no (B,V) divide)

    # logits = beta * cosine(h, e): NT matmul on the MXU.
    logits = lax.dot_general(h_n, emb_n, (((1,), (1,)), ((), ())),
                             preferred_element_type=jnp.float32)  # (TB, V)

    m = jnp.max(logits, axis=-1, keepdims=True)                 # (TB, 1)
    p = jnp.exp(logits - m)                                     # unnormalized softmax
    s = jnp.sum(p, axis=-1, keepdims=True)                      # (TB, 1)

    # Retrieval with the original (unnormalized) embeddings; defer the softmax
    # normalization past the matmul: scale the (TB, Hp) result, not (TB, V).
    ret = jnp.dot(p, emb, preferred_element_type=jnp.float32)   # (TB, Hp)
    inv_s = pl.reciprocal(s, approx=True)                       # EUP slot, ~free
    out_ref[...] = (ret * inv_s).astype(out_ref.dtype)


def _round_up(x, m):
    return ((x + m - 1) // m) * m


def frozen_hopfield(observations, rand_obs_proj, word_embs, beta, *, batch_tile=None):
    """observations: (B, C, H, W); rand_obs_proj: (hidden, H*W);
    word_embs: (V, hidden); beta: float. Returns (B, hidden) float32."""
    B, C, H, W = observations.shape
    hidden_dim, input_dim = rand_obs_proj.shape
    assert input_dim == H * W
    V = word_embs.shape[0]

    # Lane-dense feature dims (multiples of 128).
    HWp = _round_up(input_dim, 128)
    Hp = _round_up(hidden_dim, 128)

    # ---- batch tile sized to fit VMEM comfortably on v5e/v6e/v7x -------------
    VMEM_BUDGET = 40 * 1024 * 1024          # conservative vs v7x's 64 MiB physical VMEM
    resident = 2 * (Hp * HWp + V * Hp) * 4  # proj + emb (worst-case double buffered)
    per_row = 2 * (_round_up(C, 8) * HWp * 4) + 2 * Hp * 4   # obs in (x2) + out (x2)
    if batch_tile is None:
        avail = max(VMEM_BUDGET - resident, 8 * per_row)
        batch_tile = int(min(512, max(8, avail // per_row)))
        batch_tile = max(8, (batch_tile // 8) * 8)
    if B > batch_tile:
        TB = max(8, (int(batch_tile) // 8) * 8)   # sublane-aligned partial blocks
        B_pad = _round_up(B, TB)
    else:
        TB, B_pad = B, B                          # single full-extent batch block
    grid = (B_pad // TB,)

    # ---- zero-pad operands (zeros are exactly neutral for every stage) -------
    obs_flat = observations.reshape(B, C, input_dim)
    obs_flat = jnp.pad(obs_flat, ((0, B_pad - B), (0, 0), (0, HWp - input_dim)))
    proj_p = jnp.pad(rand_obs_proj, ((0, Hp - hidden_dim), (0, HWp - input_dim)))
    emb_p = jnp.pad(word_embs, ((0, 0), (0, Hp - hidden_dim)))
    beta_arr = jnp.asarray([beta], dtype=jnp.float32)

    obs_itemsize = obs_flat.dtype.itemsize
    flops = int(2 * B_pad * HWp * Hp + 4 * B_pad * V * Hp
                + B_pad * C * HWp + 2 * V * Hp)
    bytes_accessed = int(B_pad * C * HWp * obs_itemsize
                         + (Hp * HWp + V * Hp + B_pad * Hp) * 4)
    transcendentals = int(B_pad * V + B_pad + V)

    out = pl.pallas_call(
        frozen_hopfield_kernel,
        out_shape=jax.ShapeDtypeStruct((B_pad, Hp), jnp.float32),
        grid_spec=pltpu.PrefetchScalarGridSpec(
            num_scalar_prefetch=0,
            grid=grid,
            in_specs=[
                pl.BlockSpec(memory_space=pltpu.MemorySpace.SMEM),      # beta scalar
                pl.BlockSpec((TB, C, HWp), lambda i: (i, 0, 0)),        # obs: pipelined
                pl.BlockSpec((Hp, HWp), lambda i: (0, 0)),              # proj: VMEM-resident
                pl.BlockSpec((V, Hp), lambda i: (0, 0)),                # emb:  VMEM-resident
            ],
            out_specs=pl.BlockSpec((TB, Hp), lambda i: (i, 0)),
        ),
        compiler_params=pltpu.CompilerParams(
            dimension_semantics=("parallel",),       # batch tiles across TCs on v7x
            vmem_limit_bytes=48 * 1024 * 1024,
        ),
        cost_estimate=pl.CostEstimate(
            flops=flops,
            transcendentals=transcendentals,
            bytes_accessed=bytes_accessed,
        ),
    )(beta_arr, obs_flat, proj_p, emb_p)

    return out[:B, :hidden_dim]


def frozen_hopfield_ref(observations, rand_obs_proj, word_embs, beta):
    """Pure-JAX reference mirroring the PyTorch forward."""
    B = observations.shape[0]
    x = observations.mean(axis=1).reshape(B, -1)
    h = x @ rand_obs_proj.T
    num = h @ word_embs.T
    denom = (jnp.linalg.norm(h, axis=-1)[:, None]
             @ jnp.linalg.norm(word_embs, axis=-1)[None, :] + 1e-8)
    sims = num / denom
    return jax.nn.softmax(beta * sims, axis=-1) @ word_embs


if __name__ == "__main__":
    B, C, H, W = 2, 4, 16, 16
    hidden_dim = 32
    V = 8            # number of word embeddings
    beta = 2.0

    key = jax.random.PRNGKey(0)
    k_obs, k_proj, k_emb = jax.random.split(key, 3)

    observations = jax.random.normal(k_obs, (B, C, H, W), dtype=jnp.float32)
    rand_obs_proj = (1.0 / jnp.sqrt(hidden_dim)) * jax.random.normal(
        k_proj, (hidden_dim, H * W), dtype=jnp.float32)
    word_embs = jax.random.normal(k_emb, (V, hidden_dim), dtype=jnp.float32)

    out = frozen_hopfield(observations, rand_obs_proj, word_embs, beta)
    out = jax.block_until_ready(out)

    ref = frozen_hopfield_ref(observations, rand_obs_proj, word_embs, beta)
    assert out.shape == (B, hidden_dim)
    max_diff = float(jnp.max(jnp.abs(out - ref)))
    assert jnp.allclose(out, ref, atol=1e-3, rtol=1e-3), (
        f"mismatch vs reference (max abs diff {max_diff:.3e})")

    print("KERNEL_OK")
</pallas_src>

<mosaic_0001>
module attributes {stable_mosaic.version = 11 : i64} {
  func.func @frozen_hopfield_kernel(%arg0: i32, %arg1: memref<1xf32, #tpu.memory_space<smem>>, %arg2: memref<2x4x256xf32, #tpu.memory_space<vmem>>, %arg3: memref<128x256xf32, #tpu.memory_space<vmem>>, %arg4: memref<8x128xf32, #tpu.memory_space<vmem>>, %arg5: memref<2x128xf32, #tpu.memory_space<vmem>>) attributes {dimension_semantics = [#tpu.dimension_semantics<parallel>], iteration_bounds = array<i64: 1>, scalar_prefetch = 0 : i64, scratch_operands = 0 : i64, tpu.core_type = #tpu.core_type<tc>, window_params = [{transform_indices = @transform_0, window_bounds = array<i64: 1>}, {transform_indices = @transform_1, window_bounds = array<i64: 2, 4, 256>}, {pipeline_mode = #tpu.pipeline_mode<synchronous>, transform_indices = @transform_2, window_bounds = array<i64: 128, 256>}, {pipeline_mode = #tpu.pipeline_mode<synchronous>, transform_indices = @transform_3, window_bounds = array<i64: 8, 128>}, {transform_indices = @transform_4, window_bounds = array<i64: 2, 128>}]} {
    %c0 = arith.constant 0 : index
    %c0_0 = arith.constant 0 : index
    %c0_1 = arith.constant 0 : index
    %0 = vector.load %arg2[%c0, %c0_0, %c0_1] : memref<2x4x256xf32, #tpu.memory_space<vmem>>, vector<2x4x256xf32>
    %cst = arith.constant dense<0.000000e+00> : vector<2x256xf32>
    %1 = vector.multi_reduction <add>, %0, %cst [1] : vector<2x4x256xf32> to vector<2x256xf32>
    %c0_2 = arith.constant 0 : index
    %c0_3 = arith.constant 0 : index
    %2 = vector.load %arg3[%c0_2, %c0_3] : memref<128x256xf32, #tpu.memory_space<vmem>>, vector<128x256xf32>
    %cst_4 = arith.constant dense<0.000000e+00> : vector<2x128xf32>
    %3 = tpu.matmul %1, %2, %cst_4 {dimension_numbers = #tpu.dot_dimension_numbers<[1], [1], [0], [0], [0, 0, 1, 0], [], []>} : vector<2x256xf32>, vector<128x256xf32>, vector<2x128xf32> -> vector<2x128xf32>
    %c0_5 = arith.constant 0 : index
    %c0_6 = arith.constant 0 : index
    %4 = vector.load %arg4[%c0_5, %c0_6] : memref<8x128xf32, #tpu.memory_space<vmem>>, vector<8x128xf32>
    %c0_7 = arith.constant 0 : index
    %5 = memref.load %arg1[%c0_7] : memref<1xf32, #tpu.memory_space<smem>>
    %6 = arith.mulf %3, %3 : vector<2x128xf32>
    %cst_8 = arith.constant dense<0.000000e+00> : vector<2xf32>
    %7 = vector.multi_reduction <add>, %6, %cst_8 [1] : vector<2x128xf32> to vector<2xf32>
    %8 = vector.shape_cast %7 : vector<2xf32> to vector<2x1xf32>
    %cst_9 = arith.constant 1.000000e-16 : f32
    %9 = vector.broadcast %cst_9 : f32 to vector<2x1xf32>
    %10 = arith.maximumf %8, %9 : vector<2x1xf32>
    %11 = math.rsqrt %10 : vector<2x1xf32>
    %12 = arith.mulf %4, %4 : vector<8x128xf32>
    %cst_10 = arith.constant dense<0.000000e+00> : vector<8xf32>
    %13 = vector.multi_reduction <add>, %12, %cst_10 [1] : vector<8x128xf32> to vector<8xf32>
    %14 = vector.shape_cast %13 : vector<8xf32> to vector<8x1xf32>
    %cst_11 = arith.constant 1.000000e-16 : f32
    %15 = vector.broadcast %cst_11 : f32 to vector<8x1xf32>
    %16 = arith.maximumf %14, %15 : vector<8x1xf32>
    %17 = math.rsqrt %16 : vector<8x1xf32>
    %18 = vector.broadcast %5 : f32 to vector<2x1xf32>
    %19 = arith.mulf %18, %11 : vector<2x1xf32>
    %20 = vector.broadcast %19 : vector<2x1xf32> to vector<2x128xf32>
    %21 = arith.mulf %3, %20 : vector<2x128xf32>
    %22 = vector.broadcast %17 : vector<8x1xf32> to vector<8x128xf32>
    %23 = arith.mulf %4, %22 : vector<8x128xf32>
    %cst_12 = arith.constant dense<0.000000e+00> : vector<2x8xf32>
    %24 = tpu.matmul %21, %23, %cst_12 {dimension_numbers = #tpu.dot_dimension_numbers<[1], [1], [0], [0], [0, 0, 1, 0], [], []>} : vector<2x128xf32>, vector<8x128xf32>, vector<2x8xf32> -> vector<2x8xf32>
    %cst_13 = arith.constant dense<0xFF800000> : vector<2xf32>
    %25 = vector.multi_reduction <maximumf>, %24, %cst_13 [1] : vector<2x8xf32> to vector<2xf32>
    %26 = vector.shape_cast %25 : vector<2xf32> to vector<2x1xf32>
    %27 = vector.broadcast %26 : vector<2x1xf32> to vector<2x8xf32>
    %28 = arith.subf %24, %27 : vector<2x8xf32>
    %29 = math.exp %28 : vector<2x8xf32>
    %cst_14 = arith.constant dense<0.000000e+00> : vector<2xf32>
    %30 = vector.multi_reduction <add>, %29, %cst_14 [1] : vector<2x8xf32> to vector<2xf32>
    %31 = vector.shape_cast %30 : vector<2xf32> to vector<2x1xf32>
    %cst_15 = arith.constant dense<0.000000e+00> : vector<2x128xf32>
    %32 = tpu.matmul %29, %4, %cst_15 {dimension_numbers = #tpu.dot_dimension_numbers<[1], [0], [0], [1], [0, 0, 1, 1], [], []>} : vector<2x8xf32>, vector<8x128xf32>, vector<2x128xf32> -> vector<2x128xf32>
    %33 = tpu.reciprocal %31 {approx = true} : vector<2x1xf32> -> vector<2x1xf32>
    %34 = vector.broadcast %33 : vector<2x1xf32> to vector<2x128xf32>
    %35 = arith.mulf %32, %34 : vector<2x128xf32>
    %c0_16 = arith.constant 0 : index
    %c0_17 = arith.constant 0 : index
    %36 = vector.load %arg5[%c0_16, %c0_17] : memref<2x128xf32, #tpu.memory_space<vmem>>, vector<2x128xf32>
    tpu.vector_store %arg5[%c0_16, %c0_17], %35 {strides = array<i32>} : memref<2x128xf32, #tpu.memory_space<vmem>>, vector<2x128xf32>,
    return
  }
  func.func @transform_0(%arg0: i32) -> i32 {
    %c0_i32 = arith.constant 0 : i32
    %c0_i32_0 = arith.constant 0 : i32
    return %c0_i32 : i32
  }
  func.func @transform_1(%arg0: i32) -> (i32, i32, i32) {
    %c0_i32 = arith.constant 0 : i32
    %c0_i32_0 = arith.constant 0 : i32
    %c0_i32_1 = arith.constant 0 : i32
    return %arg0, %c0_i32, %c0_i32_0 : i32, i32, i32
  }
  func.func @transform_2(%arg0: i32) -> (i32, i32) {
    %c0_i32 = arith.constant 0 : i32
    %c0_i32_0 = arith.constant 0 : i32
    %c0_i32_1 = arith.constant 0 : i32
    return %c0_i32, %c0_i32_0 : i32, i32
  }
  func.func @transform_3(%arg0: i32) -> (i32, i32) {
    %c0_i32 = arith.constant 0 : i32
    %c0_i32_0 = arith.constant 0 : i32
    %c0_i32_1 = arith.constant 0 : i32
    return %c0_i32, %c0_i32_0 : i32, i32
  }
  func.func @transform_4(%arg0: i32) -> (i32, i32) {
    %c0_i32 = arith.constant 0 : i32
    %c0_i32_0 = arith.constant 0 : i32
    return %arg0, %c0_i32 : i32, i32
  }
}

</mosaic_0001>

<bundles_post_ra>
// kernel: tpu_custom_call.1
= control target key start
LH: loop header
LB: loop body
LE: loop exit
PB: predicated region body
PF: predicated region fallthrough
CT: control target
= control target key end

     0   :  { %10 = vsyncpa [#allocation4], 0  ;;  %s473_s0 = inlined_call_operand.<no memory space> [shape: f32[1], index: 0, kind: input, shape index: {}]   ;;  %s474_s1 = inlined_call_operand.hbm [shape: f32[2,4,256], index: 1, kind: input, shape index: {}]   ;;  %s475_s2 = inlined_call_operand.hbm [shape: f32[128,256], index: 2, kind: input, shape index: {}]   ;;  %s476_s3 = inlined_call_operand.hbm [shape: f32[8,128], index: 3, kind: input, shape index: {}]   ;;  %s477_s4 = inlined_call_operand.hbm [shape: f32[2,128], index: 4, kind: output, shape index: {}]  }
   0x1   :  { %11 = vsyncpa [#allocation7], 0  ;;  %s32_s17 = sshll.u32 %s475_s2, 4  ;;  %s33_s17 = int_to_ptr.hbm [resolvable:$true] %s32_s17 }
   0x2   :  { %12 = vsyncpa [#allocation5], 0  ;;  %s419_s18 = smov [#allocation6]   ;;  %s19_s22 = sshll.u32 %s474_s1, 4  ;;  %s20_s22 = int_to_ptr.hbm [resolvable:$true] %s19_s22 }
   0x3   :  { %s34_s19 = sshll.u32 %s419_s18, 4  ;;  %s420_s23 = smov 256   ;;  %s35_s19 = int_to_ptr.vmem [resolvable:$true] %s34_s19 }
   0x4   :  { %s421_s24 = smov 16   ;;  %s422_s25 = smov [#allocation3]  }
   0x5   :  { %40 = dma.hbm_to_vmem [thread:$0]  %s33_s17, 4096, %s35_s19, [#allocation7], %s420_s23, %s420_s23, %s421_s24  }
   0x6   :  { %s21_s26 = sshll.u32 %s422_s25, 4  ;;  %s423_s27 = smov 128   ;;  %s22_s26 = int_to_ptr.vmem [resolvable:$true] %s21_s26 }
   0x7   :  { %s424_s28 = smov 8   ;;  %s46_s30 = sshll.u32 %s476_s3, 4  ;;  %s47_s30 = int_to_ptr.hbm [resolvable:$true] %s46_s30 }
   0x8   :  { %27 = dma.hbm_to_vmem [thread:$0]  %s20_s22, 256, %s22_s26, [#allocation4], %s423_s27, %s423_s27, %s424_s28  }
   0x9   :  { %s425_s5 = smov [#allocation8]  }
   0xa   :  { %s48_s6 = sshll.u32 %s425_s5, 4  ;;  %s49_s6 = int_to_ptr.vmem [resolvable:$true] %s48_s6 }
   0xb   :  { %51 = dma.hbm_to_vmem [thread:$0]  %s47_s30, 128, %s49_s6, [#allocation7]  }
   0xc   :  { %413 = dma.done.wait [#allocation4], 256  }
   0xd   :  { %414 = vsyncadd [#allocation4], 4294967040 }
   0xe   :  { %415 = dma.done.wait [#allocation7], 4224  }
   0xf   :  { %416 = vsyncadd [#allocation7], 4294963072  ;;  %v138_v0 = vld [vmem:[#allocation6 + $0xf0] sm:$0xff]  ;;  %v139_v1 = vld [vmem:[#allocation6 + $0xf8] sm:$0xff]  ;;  %vm79_vm0 = vcmask 1043456   ;;  %vm144_vm1 = vcmask 1041409  }
  0x10   :  { %149 = vmatpush.xpose.msra.mxu0 %v138_v0  ;;  %169 = vmatpush.xpose.msra.mxu1 %v139_v1  ;;  %v136_v2 = vld [vmem:[#allocation6 + $0xe0] sm:$0xff]  ;;  %v137_v3 = vld [vmem:[#allocation6 + $0xe8] sm:$0xff]  ;;  %v134_v4 = vld [vmem:[#allocation6 + $0xd0] sm:$0xff]  ;;  %vm192_vm5 = vcmask 1041408   ;;  %vm245_vm9 = vcmask 58368   ;;  %vm255_vm10 = vcmask 64512  }
  0x11   :  { %v135_v5 = vld [vmem:[#allocation6 + $0xd8] sm:$0xff]  ;;  %v64_v6 = vld [vmem:[#allocation3] sm:$0xff]  ;;  %v132_v8 = vld [vmem:[#allocation6 + $0xc0] sm:$0xff]  ;;  %s289_s10 = sshll.u32 %s477_s4, 4  ;;  %s290_s10 = int_to_ptr.hbm [resolvable:$true] %s289_s10 }
  0x12   :  { %v65_v7 = vld [vmem:[#allocation3 + $0x8] sm:$0xff]  ;;  %v133_v9 = vld [vmem:[#allocation6 + $0xc8] sm:$0xff]  ;;  %68 = vst [vmem:[#allocation1] ss:$2 sm:$0xff] %v64_v6  ;;  %v130_v10 = vld [vmem:[#allocation6 + $0xb0] sm:$0xff] }
  0x13   :  { %72 = vst [vmem:[#allocation1 + $0x10] ss:$2 sm:$0xff] %v65_v7  ;;  %v131_v11 = vld [vmem:[#allocation6 + $0xb8] sm:$0xff]  ;;  %v128_v12 = vld [vmem:[#allocation6 + $0xa0] sm:$0xff]  ;;  %v129_v13 = vld [vmem:[#allocation6 + $0xa8] sm:$0xff] }
  0x14   :  { %150 = vmatpush.xpose.msra.mxu0 %v136_v2  ;;  %170 = vmatpush.xpose.msra.mxu1 %v137_v3  ;;  %v126_v14 = vld [vmem:[#allocation6 + $0x90] sm:$0xff]  ;;  %v127_v15 = vld [vmem:[#allocation6 + $0x98] sm:$0xff]  ;;  %v124_v16 = vld [vmem:[#allocation6 + $0x80] sm:$0xff] }
  0x15   :  { %v125_v17 = vld [vmem:[#allocation6 + $0x88] sm:$0xff]  ;;  %v122_v19 = vld [vmem:[#allocation6 + $0x70] sm:$0xff]  ;;  %v123_v20 = vld [vmem:[#allocation6 + $0x78] sm:$0xff] }
  0x16   :  { %v461_v24 = vld [vmem:[#allocation8] sm:$0xff]  ;;  %v121_v28 = vld [vmem:[#allocation6 + $0x68] sm:$0xff]  ;;  %v118_v36 = vld [vmem:[#allocation6 + $0x50] sm:$0xff] }
  0x17   :  { %v207_v26 = vmul.f32 %v461_v24, %v461_v24  ;;  %v120_v27 = vld [vmem:[#allocation6 + $0x60] sm:$0xff]  ;;  %274 = vmatpush.msra.mxu3 %v461_v24  ;;  %v119_v37 = vld [vmem:[#allocation6 + $0x58] sm:$0xff]  ;;  %v117_v43 = vld [vmem:[#allocation6 + $0x48] sm:$0xff] }
  0x18   :  { %151 = vmatpush.xpose.msra.mxu0 %v134_v4  ;;  %171 = vmatpush.xpose.msra.mxu1 %v135_v5  ;;  %v116_v42 = vld [vmem:[#allocation6 + $0x40] sm:$0xff]  ;;  %v114_v48 = vld [vmem:[#allocation6 + $0x30] sm:$0xff]  ;;  %v115_v49 = vld [vmem:[#allocation6 + $0x38] sm:$0xff] }
  0x19   :  { %v69_v18 = vld.sshfl [vmem:[#allocation1] sm:$0xff pattern:$0x75316420]  ;;  %v70_v22 = vld.sshfl [vmem:[#allocation1 + $0x8] sm:$0xff pattern:$0x75316420]  ;;  %208 = vadd.xlane.f32.xlu0 %v207_v26 }
  0x1a   :  { %v73_v21 = vld.sshfl [vmem:[#allocation1 + $0x10] sm:$0xff pattern:$0x75316420]  ;;  %v74_v23 = vld.sshfl [vmem:[#allocation1 + $0x18] sm:$0xff pattern:$0x75316420] }
  0x1b   :  { %v80_v25 = vsel %vm79_vm0, %v69_v18, 0.0  ;;  %v94_v29 = vsel %vm79_vm0, %v73_v21, 0.0  ;;  %v87_v30 = vsel %vm79_vm0, %v70_v22, 0.0  ;;  %v101_v31 = vsel %vm79_vm0, %v74_v23, 0.0  ;;  %v112_v54 = vld [vmem:[#allocation6 + $0x20] sm:$0xff]  ;;  %v113_v55 = vld [vmem:[#allocation6 + $0x28] sm:$0xff] }
  0x1c   :  { %152 = vmatpush.xpose.msra.mxu0 %v132_v8  ;;  %172 = vmatpush.xpose.msra.mxu1 %v133_v9  ;;  %v81_v32 = vrot.slane %v80_v25, 4  ;;  %v95_v33 = vrot.slane %v94_v29, 4  ;;  %v88_v34 = vrot.slane %v87_v30, 4  ;;  %v102_v35 = vrot.slane %v101_v31, 4  ;;  %v110_v60 = vld [vmem:[#allocation6 + $0x10] sm:$0xff]  ;;  %v111_v61 = vld [vmem:[#allocation6 + $0x18] sm:$0xff] }
  0x1d   :  { %v108_v2 = vld [vmem:[#allocation6] sm:$0xff]  ;;  %v109_v3 = vld [vmem:[#allocation6 + $0x8] sm:$0xff] }
  0x1e   :  { %v82_v38 = vadd.f32 %v81_v32, %v80_v25  ;;  %v96_v39 = vadd.f32 %v95_v33, %v94_v29  ;;  %v89_v40 = vadd.f32 %v88_v34, %v87_v30  ;;  %v103_v41 = vadd.f32 %v102_v35, %v101_v31 }
  0x20   :  { %153 = vmatpush.xpose.msra.mxu0 %v130_v10  ;;  %173 = vmatpush.xpose.msra.mxu1 %v131_v11  ;;  %v83_v44 = vrot.slane %v82_v38, 2  ;;  %v97_v45 = vrot.slane %v96_v39, 2  ;;  %v90_v46 = vrot.slane %v89_v40, 2  ;;  %v104_v47 = vrot.slane %v103_v41, 2 }
  0x22   :  { %v84_v50 = vadd.f32 %v83_v44, %v82_v38  ;;  %v98_v51 = vadd.f32 %v97_v45, %v96_v39  ;;  %v91_v52 = vadd.f32 %v90_v46, %v89_v40  ;;  %v105_v53 = vadd.f32 %v104_v47, %v103_v41 }
  0x24   :  { %154 = vmatpush.xpose.msra.mxu0 %v128_v12  ;;  %174 = vmatpush.xpose.msra.mxu1 %v129_v13  ;;  %v85_v56 = vrot.slane %v84_v50, 1  ;;  %v99_v57 = vrot.slane %v98_v51, 1  ;;  %v92_v58 = vrot.slane %v91_v52, 1  ;;  %v106_v59 = vrot.slane %v105_v53, 1 }
  0x26   :  { %v86_v62 = vadd.f32 %v85_v56, %v84_v50  ;;  %v100_v63 = vadd.f32 %v99_v57, %v98_v51  ;;  %v93_v0 = vadd.f32 %v92_v58, %v91_v52  ;;  %v107_v1 = vadd.f32 %v106_v59, %v105_v53 }
  0x28   :  { %155 = vmatpush.xpose.msra.mxu0 %v126_v14  ;;  %175 = vmatpush.xpose.msra.mxu1 %v127_v15  ;;  %v145_v4 = vsel %vm144_vm1, %v100_v63, %v86_v62  ;;  %v146_v5 = vsel %vm144_vm1, %v107_v1, %v93_v0 }
  0x2c   :  { %156 = vmatpush.xpose.msra.mxu0 %v124_v16  ;;  %176 = vmatpush.xpose.msra.mxu1 %v125_v17 }
  0x30   :  { %157 = vmatpush.xpose.msra.mxu0 %v122_v19  ;;  %177 = vmatpush.xpose.msra.mxu1 %v123_v20 }
  0x34   :  { %158 = vmatpush.xpose.msra.mxu0 %v120_v27  ;;  %178 = vmatpush.xpose.msra.mxu1 %v121_v28 }
  0x38   :  { %159 = vmatpush.xpose.msra.mxu0 %v118_v36  ;;  %179 = vmatpush.xpose.msra.mxu1 %v119_v37 }
  0x3c   :  { %160 = vmatpush.xpose.msra.mxu0 %v116_v42  ;;  %180 = vmatpush.xpose.msra.mxu1 %v117_v43 }
  0x40   :  { %161 = vmatpush.xpose.msra.mxu0 %v114_v48  ;;  %181 = vmatpush.xpose.msra.mxu1 %v115_v49 }
  0x44   :  { %162 = vmatpush.xpose.msra.mxu0 %v112_v54  ;;  %182 = vmatpush.xpose.msra.mxu1 %v113_v55 }
  0x48   :  { %163 = vmatpush.xpose.msra.mxu0 %v110_v60  ;;  %183 = vmatpush.xpose.msra.mxu1 %v111_v61 }
  0x4c   :  { %164 = vmatpush.xpose.msra.mxu0 %v108_v2  ;;  %184 = vmatpush.xpose.msra.mxu1 %v109_v3 }
  0x4f   :  { %165 = vmatmul.f32.vlgmr.msra.gmra.mxu0 %v145_v4  ;;  %185 = vmatmul.f32.vlgmr.msra.gmra.mxu1 %v146_v5 }
  0x8c   :  { %v209_v6 = vpop.xlane.xlu0 %208 }
  0x8d   :  { %v210_v7 = vmax.f32 %v209_v6, 1e-16 }
  0x8f   :  { %309 = vrsqrt.f32 %v210_v7  ;;  %vm217_vm2 = vweird.f32 %v210_v7 }
  0x95   :  { %v310_v8 = vpop.eup %309 }
  0x96   :  { %v212_v9 = vmul.f32 %v310_v8, %v210_v7  ;;  %vm218_vm3 = vweird.f32 %v310_v8 }
  0x97   :  { %vm219_vm4 = vmor %vm217_vm2, %vm218_vm3 }
  0x98   :  { %v213_v10 = vmul.f32 %v310_v8, %v212_v9 }
  0x9a   :  { %v214_v11 = vmul.f32 0.5, %v213_v10 }
  0x9c   :  { %v215_v12 = vsub.f32 1.5, %v214_v11 }
  0x9e   :  { %v216_v13 = vmul.f32 %v310_v8, %v215_v12 }
  0xa0   :  { %v220_v14 = vsel %vm219_vm4, %v310_v8, %v216_v13 }
  0xa1   :  { %v224_v15 = vmul.f32 %v220_v14, %v461_v24  ;;  %v221_v24 = vstv %s473_s0  ;;  %s426_s0 = smov [#allocation9]  }
  0xa2   :  { %s287_s7 = sshll.u32 %s426_s0, 4  ;;  %s288_s7 = int_to_ptr.vmem [resolvable:$true] %s287_s7 }
  0xa3   :  { %240 = vmatpush.xpose.msra.mxu2 %v224_v15 }
  0xcc   :  { %v166_v16 = vpop.f32.mrf.mxu0  ;;  %v186_v17 = vpop.f32.mrf.mxu1 }
  0xcd   :  { %v187_v18 = vadd.f32 %v186_v17, %v166_v16 }
  0xcf   :  { %v191_v19 = vmul.f32 %v187_v18, %v187_v18 }
  0xd1   :  { %v193_v20 = vsel %vm192_vm5, %v191_v19, 0.0 }
  0xd2   :  { %194 = vadd.xlane.f32.xlu0 %v193_v20 }
 0x145   :  { %v195_v21 = vpop.xlane.xlu0 %194 }
 0x146   :  { %v196_v22 = vmax.f32 %v195_v21, 1e-16 }
 0x148   :  { %311 = vrsqrt.f32 %v196_v22  ;;  %vm203_vm7 = vweird.f32 %v196_v22 }
 0x14e   :  { %v312_v23 = vpop.eup %311 }
 0x14f   :  { %v198_v25 = vmul.f32 %v312_v23, %v196_v22  ;;  %vm204_vm6 = vweird.f32 %v312_v23 }
 0x150   :  { %vm205_vm8 = vmor %vm203_vm7, %vm204_vm6 }
 0x151   :  { %v199_v26 = vmul.f32 %v312_v23, %v198_v25 }
 0x153   :  { %v200_v27 = vmul.f32 0.5, %v199_v26 }
 0x155   :  { %v201_v28 = vsub.f32 1.5, %v200_v27 }
 0x157   :  { %v202_v29 = vmul.f32 %v312_v23, %v201_v28 }
 0x159   :  { %v206_v30 = vsel %vm205_vm8, %v312_v23, %v202_v29 }
 0x15a   :  { %v222_v31 = vmul.f32 %v221_v24, %v206_v30 }
 0x15c   :  { %v223_v32 = vmul.f32 %v222_v31, %v187_v18 }
 0x15e   :  { %241 = vmatmul.f32.vlgmr.msra.gmra.mxu2 %v223_v32 }
 0x1e1   :  { %v242_v33 = vpop.f32.mrf.mxu2 }
 0x1e2   :  { %v246_v34 = vsel %vm245_vm9, %v242_v33, -inf }
 0x1e3   :  { %247 = vmax.xlane.f32.xlu1 %v246_v34 }
 0x256   :  { %v248_v35 = vpop.xlane.xlu1 %247 }
 0x257   :  { %v249_v36 = vsub.f32 %v242_v33, %v248_v35 }
 0x259   :  { %v250_v37 = vmul.f32 1.442695, %v249_v36 }
 0x25b   :  { %313 = vpow2.f32 %v250_v37 }
 0x261   :  { %v314_v38 = vpop.eup %313 }
 0x262   :  { %300 = vmatmul.msk.f32.vlgmr.msra.gmra.mxu3 %vm255_vm10, %v314_v38  ;;  %v252_v39 = vsel %vm245_vm9, %v314_v38, 0.0 }
 0x263   :  { %253 = vadd.xlane.f32.xlu1 %v252_v39 }
 0x2d6   :  { %v254_v40 = vpop.xlane.xlu1 %253 }
 0x2d7   :  { %315 = vrcp.f32 %v254_v40 }
 0x2dd   :  { %v316_v41 = vpop.eup %315 }
 0x2e5   :  { %v276_v42 = vpop.f32.mrf.mxu3 }
 0x2e6   :  { %v280_v43 = vmul.f32 %v316_v41, %v276_v42 }
 0x2e8   :  { %281 = vst [vmem:[#allocation9] sm:$0x3] %v280_v43 }
 0x2e9   :  { %292 = dma.vmem_to_hbm [thread:$0]  %s288_s7, 32, %s290_s10, [#allocation5]  }
 0x2ea   :  { %417 = dma.done.wait [#allocation5], 32  }
 0x2eb   :  { %418 = vsyncadd [#allocation5], 4294967264 }
 0x2ec   :  { %297 = vsyncpa [#allocation4], 1 }
 0x2ed   :  { %298 = vsyncpa [#allocation7], 1 }
 0x2ee   :  { %299 = vsyncpa [#allocation5], 1 }

</bundles_post_ra>
